<compile_context>
chip_gen: v7x
topology: tpu7x:2x2x1
jax: 0.10.0
libtpu: 0.0.40
codegen_flags: <defaults>
</compile_context>

<pallas_src>
import functools

import jax
import jax.numpy as jnp
from jax.experimental import pallas as pl
from jax.experimental.pallas import tpu as pltpu

EPS = 1e-5


# ----------------------------------------------------------------------------
# Generation-aware sizing helpers
# ----------------------------------------------------------------------------
def _tpu_vmem_capacity_bytes():
    """Per-TensorCore VMEM capacity; conservative fallback if the query fails."""
    try:
        return int(pltpu.get_tpu_info().vmem_capacity_bytes)
    except Exception:
        return 64 * 1024 * 1024          # v7x-sized (smallest of v5e/v6e/v7x)


def _dtype_packing(dtype):
    itemsize = jnp.dtype(dtype).itemsize
    sub_pack = {4: 8, 2: 16, 1: 32}.get(itemsize, 8)   # sublane packing
    return sub_pack, itemsize


def _compiler_params(dim_semantics, vmem_limit_bytes):
    return pltpu.CompilerParams(
        dimension_semantics=dim_semantics,
        vmem_limit_bytes=int(vmem_limit_bytes),
    )


def _pick_c_blk(c, sub_pack, per_channel_bytes, budget_bytes, prefer_split=True):
    """Largest multiple of sub_pack dividing c whose slab fits the budget.

    When possible keep >= 2 channel-grid steps so megacore (v7x, 2 TCs) can
    shard the 'parallel' channel axis; the extra grid step is ~0.35 us on
    single-TC chips (negligible at these tile sizes)."""
    if c % sub_pack != 0:
        return c                                  # full extent satisfies tiling rule
    max_cb = (budget_bytes // max(per_channel_bytes, 1)) // sub_pack * sub_pack
    max_cb = max(sub_pack, max_cb)
    cb = min(c, max_cb)
    while c % cb != 0:
        cb -= sub_pack
    if prefer_split and cb == c and c >= 2 * sub_pack:
        cb = (c // 2) // sub_pack * sub_pack
        while c % cb != 0:
            cb -= sub_pack
    return cb


# ----------------------------------------------------------------------------
# Kernels
# ----------------------------------------------------------------------------
def _slice_params(params_ref, ci, cb):
    """Slice (cb, 2) rows out of the resident full (C, 2) params array."""
    start = ci * cb
    if cb % 8 == 0:
        start = pl.multiple_of(start, 8)
    return params_ref[pl.ds(start, cb), :]


def _bn_relu_fused_kernel(x_ref, params_ref, o_ref):
    """Single pass: batch stats + normalize + ReLU for one channel block.

    x_ref/o_ref: (N, c_blk, HW); params_ref: full (C, 2) = [gamma, beta],
    resident in VMEM (constant block index)."""
    ci = pl.program_id(0)
    n, cb, hw = x_ref.shape
    p = _slice_params(params_ref, ci, cb)                    # (cb, 2)
    gamma = p[:, 0:1].reshape(1, cb, 1)
    beta = p[:, 1:2].reshape(1, cb, 1)

    x = x_ref[...].astype(jnp.float32)
    inv_l = 1.0 / float(n * hw)
    # Uncentered formulation: no full-tile `centered` temp (smaller VMEM
    # working set -> larger fused tiles, esp. on v7x).
    s = jnp.sum(jnp.sum(x, axis=2, keepdims=True), axis=0, keepdims=True)
    ssq = jnp.sum(jnp.sum(x * x, axis=2, keepdims=True), axis=0, keepdims=True)
    mean = s * inv_l
    var = jnp.maximum(ssq * inv_l - mean * mean, 0.0)        # guard cancellation
    inv_std = jax.lax.rsqrt(var + EPS)

    scale = gamma * inv_std
    shift = beta - mean * scale
    o_ref[...] = jnp.maximum(x * scale + shift, 0.0).astype(o_ref.dtype)


def _bn_stats_kernel(x_ref, sum_ref, ssq_ref):
    """Phase 1: accumulate per-channel sum / sum-of-squares over the (N, HW)
    reduction grid axes.  x_ref: (n_blk, c_blk, hw_blk); outputs (c_blk, 1)."""
    first = jnp.logical_and(pl.program_id(1) == 0, pl.program_id(2) == 0)

    @pl.when(first)
    def _():
        sum_ref[...] = jnp.zeros_like(sum_ref)
        ssq_ref[...] = jnp.zeros_like(ssq_ref)

    x = x_ref[...].astype(jnp.float32)
    sum_ref[...] += jnp.sum(jnp.sum(x, axis=2, keepdims=True), axis=0)
    ssq_ref[...] += jnp.sum(jnp.sum(x * x, axis=2, keepdims=True), axis=0)


def _bn_apply_kernel(x_ref, params_ref, o_ref):
    """Phase 2: y = max(x*scale + shift, 0); params_ref: full (C, 2) = [scale, shift]."""
    ci = pl.program_id(0)
    cb = x_ref.shape[1]
    p = _slice_params(params_ref, ci, cb)
    scale = p[:, 0:1].reshape(1, cb, 1)
    shift = p[:, 1:2].reshape(1, cb, 1)
    x = x_ref[...].astype(jnp.float32)
    o_ref[...] = jnp.maximum(x * scale + shift, 0.0).astype(o_ref.dtype)


# ----------------------------------------------------------------------------
# pallas_call wrappers
# ----------------------------------------------------------------------------
def _fused_call(x, params, c_blk, vmem_limit):
    n, c, hw = x.shape
    return pl.pallas_call(
        _bn_relu_fused_kernel,
        out_shape=jax.ShapeDtypeStruct((n, c, hw), x.dtype),
        grid_spec=pltpu.PrefetchScalarGridSpec(
            num_scalar_prefetch=0,
            grid=(c // c_blk,),
            in_specs=[
                pl.BlockSpec((n, c_blk, hw), lambda ci: (0, ci, 0)),
                pl.BlockSpec((c, 2), lambda ci: (0, 0)),       # resident params
            ],
            out_specs=pl.BlockSpec((n, c_blk, hw), lambda ci: (0, ci, 0)),
        ),
        compiler_params=_compiler_params(("parallel",), vmem_limit),
    )(x, params)


def _two_phase_call(x, g, b, budget, vmem_limit, sub_pack, itemsize):
    n, c, hw = x.shape

    # ---- tile selection ------------------------------------------------
    c_blk = sub_pack if c % sub_pack == 0 else c
    if hw % 128 == 0:
        max_cols = max(128, (budget // max(n * c_blk * itemsize, 1)) // 128 * 128)
        hw_blk = min(hw, max_cols)
        while hw % hw_blk != 0:
            hw_blk -= 128
    else:
        hw_blk = hw                      # full extent satisfies the (8,128) rule

    if hw_blk == hw:
        # Whole spatial extent per step: grow the channel block into the budget.
        c_blk = _pick_c_blk(c, sub_pack, n * hw * itemsize, budget)

    # Block over N if the tile still exceeds the budget (e.g. non-128 HW).
    n_blk = 1
    for cand in range(n, 0, -1):
        if n % cand == 0 and cand * c_blk * hw_blk * itemsize <= budget:
            n_blk = cand
            break

    grid = (c // c_blk, n // n_blk, hw // hw_blk)
    x_spec = pl.BlockSpec((n_blk, c_blk, hw_blk), lambda ci, ni, li: (ni, ci, li))

    # ---- phase 1: per-channel sum / sum-of-squares ----------------------
    ch_sum, ch_ssq = pl.pallas_call(
        _bn_stats_kernel,
        out_shape=(jax.ShapeDtypeStruct((c, 1), jnp.float32),
                   jax.ShapeDtypeStruct((c, 1), jnp.float32)),
        grid_spec=pltpu.PrefetchScalarGridSpec(
            num_scalar_prefetch=0,
            grid=grid,
            in_specs=[x_spec],
            out_specs=[pl.BlockSpec((c_blk, 1), lambda ci, ni, li: (ci, 0)),
                       pl.BlockSpec((c_blk, 1), lambda ci, ni, li: (ci, 0))],
        ),
        compiler_params=_compiler_params(("parallel", "arbitrary", "arbitrary"),
                                         vmem_limit),
    )(x)

    # ---- fold stats + affine into per-channel scale/shift (tiny JAX) ----
    inv_l = 1.0 / float(n * hw)
    mean = ch_sum * inv_l
    var = jnp.maximum(ch_ssq * inv_l - mean * mean, 0.0)
    inv_std = jax.lax.rsqrt(var + EPS)
    scale = g * inv_std
    shift = b - mean * scale
    params2 = jnp.concatenate([scale, shift], axis=1)          # (C, 2)

    # ---- phase 2: fully parallel normalize + ReLU -----------------------
    return pl.pallas_call(
        _bn_apply_kernel,
        out_shape=jax.ShapeDtypeStruct((n, c, hw), x.dtype),
        grid_spec=pltpu.PrefetchScalarGridSpec(
            num_scalar_prefetch=0,
            grid=grid,
            in_specs=[
                pl.BlockSpec((n_blk, c_blk, hw_blk), lambda ci, ni, li: (ni, ci, li)),
                pl.BlockSpec((c, 2), lambda ci, ni, li: (0, 0)),   # resident params
            ],
            out_specs=pl.BlockSpec((n_blk, c_blk, hw_blk), lambda ci, ni, li: (ni, ci, li)),
        ),
        compiler_params=_compiler_params(("parallel", "parallel", "parallel"),
                                         vmem_limit),
    )(x, params2)


@functools.partial(jax.jit, static_argnames=("tile_budget_bytes", "force_two_phase"))
def batchnorm_relu(x_nchw, gamma, beta, *, tile_budget_bytes=None,
                   force_two_phase=False):
    """BatchNorm2d (training-mode batch stats, eps=1e-5) + ReLU.  x: (N,C,H,W)."""
    n, c, h, w = x_nchw.shape
    hw = h * w
    x = x_nchw.reshape(n, c, hw)                 # free reshape, no HBM transpose
    g = gamma.reshape(c, 1).astype(jnp.float32)
    b = beta.reshape(c, 1).astype(jnp.float32)
    params = jnp.concatenate([g, b], axis=1)     # (C, 2): [gamma, beta]

    # Generation-aware sizing: ~VMEM/10 per tile, vmem limit ~7/8 of capacity
    # (-> ~12.8 MiB / 100 MiB on v5e/v6e 128 MiB, ~6.4 MiB / 56 MiB on v7x 64 MiB).
    vmem_cap = _tpu_vmem_capacity_bytes()
    vmem_limit = max(min(vmem_cap * 7 // 8, 100 * 1024 * 1024), 32 * 1024 * 1024)
    budget = (tile_budget_bytes if tile_budget_bytes is not None
              else max(vmem_cap // 10, 2 * 1024 * 1024))

    sub_pack, itemsize = _dtype_packing(x.dtype)
    min_cb = sub_pack if c % sub_pack == 0 else c
    fused_min_slab = n * min_cb * hw * itemsize  # smallest possible fused tile

    if (not force_two_phase) and fused_min_slab <= budget:
        c_blk = _pick_c_blk(c, sub_pack, n * hw * itemsize, budget)
        out = _fused_call(x, params, c_blk, vmem_limit)
    else:
        out = _two_phase_call(x, g, b, budget, vmem_limit, sub_pack, itemsize)
    return out.reshape(n, c, h, w)


# ----------------------------------------------------------------------------
# Test
# ----------------------------------------------------------------------------
def _reference(x, gamma, beta):
    mean = jnp.mean(x, axis=(0, 2, 3), keepdims=True)
    var = jnp.mean((x - mean) ** 2, axis=(0, 2, 3), keepdims=True)
    y = (x - mean) * jax.lax.rsqrt(var + EPS)
    y = y * gamma.reshape(1, -1, 1, 1) + beta.reshape(1, -1, 1, 1)
    return jnp.maximum(y, 0.0)


if __name__ == "__main__":
    key = jax.random.PRNGKey(0)
    keys = jax.random.split(key, 9)

    # 1) Module-consistent small shape (fused path, C not a multiple of 8).
    N, C, H, W = 2, 4, 16, 16
    x = jax.random.normal(keys[0], (N, C, H, W), dtype=jnp.float32)
    gamma = 1.0 + 0.1 * jax.random.normal(keys[1], (C,), dtype=jnp.float32)
    beta = 0.1 * jax.random.normal(keys[2], (C,), dtype=jnp.float32)
    out = jax.block_until_ready(batchnorm_relu(x, gamma, beta))
    assert jnp.max(jnp.abs(out - _reference(x, gamma, beta))) < 1e-4

    # 2) Fused path with adaptive c_blk (>=2 channel steps) and hw < 128
    #    (masked lane stores), exercising the resident-params dynamic slice.
    N2, C2, H2, W2 = 2, 16, 7, 7
    x2 = jax.random.normal(keys[3], (N2, C2, H2, W2), dtype=jnp.float32)
    gamma2 = 1.0 + 0.1 * jax.random.normal(keys[4], (C2,), dtype=jnp.float32)
    beta2 = 0.1 * jax.random.normal(keys[5], (C2,), dtype=jnp.float32)
    out2 = jax.block_until_ready(batchnorm_relu(x2, gamma2, beta2))
    assert jnp.max(jnp.abs(out2 - _reference(x2, gamma2, beta2))) < 1e-4

    # 3) Two-phase (stats + apply) path with a multi-step reduction grid.
    N3, C3, H3, W3 = 2, 8, 16, 16
    x3 = jax.random.normal(keys[6], (N3, C3, H3, W3), dtype=jnp.float32)
    gamma3 = 1.0 + 0.1 * jax.random.normal(keys[7], (C3,), dtype=jnp.float32)
    beta3 = 0.1 * jax.random.normal(keys[8], (C3,), dtype=jnp.float32)
    out3 = jax.block_until_ready(
        batchnorm_relu(x3, gamma3, beta3,
                       force_two_phase=True, tile_budget_bytes=8 * 1024))
    assert jnp.max(jnp.abs(out3 - _reference(x3, gamma3, beta3))) < 1e-4

    print("KERNEL_OK")
</pallas_src>

<mosaic_0001>
module attributes {stable_mosaic.version = 11 : i64} {
  func.func @_bn_relu_fused_kernel(%arg0: i32, %arg1: memref<2x4x256xf32, #tpu.memory_space<vmem>>, %arg2: memref<4x2xf32, #tpu.memory_space<vmem>>, %arg3: memref<2x4x256xf32, #tpu.memory_space<vmem>>) attributes {dimension_semantics = [#tpu.dimension_semantics<parallel>], iteration_bounds = array<i64: 1>, scalar_prefetch = 0 : i64, scratch_operands = 0 : i64, tpu.core_type = #tpu.core_type<tc>, window_params = [{transform_indices = @transform_0, window_bounds = array<i64: 2, 4, 256>}, {pipeline_mode = #tpu.pipeline_mode<synchronous>, transform_indices = @transform_1, window_bounds = array<i64: 4, 2>}, {transform_indices = @transform_2, window_bounds = array<i64: 2, 4, 256>}]} {
    %c4_i32 = arith.constant 4 : i32
    %0 = arith.muli %arg0, %c4_i32 : i32
    %1 = arith.index_cast %0 : i32 to index
    %c0 = arith.constant 0 : index
    %2 = vector.load %arg2[%1, %c0] : memref<4x2xf32, #tpu.memory_space<vmem>>, vector<4x2xf32>
    %3 = vector.extract_strided_slice %2 {offsets = [0, 0], sizes = [4, 1], strides = [1, 1]} : vector<4x2xf32> to vector<4x1xf32>
    %4 = vector.shape_cast %3 : vector<4x1xf32> to vector<1x4x1xf32>
    %5 = vector.extract_strided_slice %2 {offsets = [0, 1], sizes = [4, 1], strides = [1, 1]} : vector<4x2xf32> to vector<4x1xf32>
    %6 = vector.shape_cast %5 : vector<4x1xf32> to vector<1x4x1xf32>
    %c0_0 = arith.constant 0 : index
    %c0_1 = arith.constant 0 : index
    %c0_2 = arith.constant 0 : index
    %7 = vector.load %arg1[%c0_0, %c0_1, %c0_2] : memref<2x4x256xf32, #tpu.memory_space<vmem>>, vector<2x4x256xf32>
    %cst = arith.constant dense<0.000000e+00> : vector<2x4xf32>
    %8 = vector.multi_reduction <add>, %7, %cst [2] : vector<2x4x256xf32> to vector<2x4xf32>
    %9 = vector.shape_cast %8 : vector<2x4xf32> to vector<2x4x1xf32>
    %cst_3 = arith.constant dense<0.000000e+00> : vector<4x1xf32>
    %10 = vector.multi_reduction <add>, %9, %cst_3 [0] : vector<2x4x1xf32> to vector<4x1xf32>
    %11 = vector.shape_cast %10 : vector<4x1xf32> to vector<1x4x1xf32>
    %12 = arith.mulf %7, %7 : vector<2x4x256xf32>
    %cst_4 = arith.constant dense<0.000000e+00> : vector<2x4xf32>
    %13 = vector.multi_reduction <add>, %12, %cst_4 [2] : vector<2x4x256xf32> to vector<2x4xf32>
    %14 = vector.shape_cast %13 : vector<2x4xf32> to vector<2x4x1xf32>
    %cst_5 = arith.constant dense<0.000000e+00> : vector<4x1xf32>
    %15 = vector.multi_reduction <add>, %14, %cst_5 [0] : vector<2x4x1xf32> to vector<4x1xf32>
    %16 = vector.shape_cast %15 : vector<4x1xf32> to vector<1x4x1xf32>
    %cst_6 = arith.constant 0.001953125 : f32
    %17 = vector.broadcast %cst_6 : f32 to vector<1x4x1xf32>
    %18 = arith.mulf %11, %17 : vector<1x4x1xf32>
    %cst_7 = arith.constant 0.001953125 : f32
    %19 = vector.broadcast %cst_7 : f32 to vector<1x4x1xf32>
    %20 = arith.mulf %16, %19 : vector<1x4x1xf32>
    %21 = arith.mulf %18, %18 : vector<1x4x1xf32>
    %22 = arith.subf %20, %21 : vector<1x4x1xf32>
    %cst_8 = arith.constant 0.000000e+00 : f32
    %23 = vector.broadcast %cst_8 : f32 to vector<1x4x1xf32>
    %24 = arith.maximumf %22, %23 : vector<1x4x1xf32>
    %cst_9 = arith.constant 9.99999974E-6 : f32
    %25 = vector.broadcast %cst_9 : f32 to vector<1x4x1xf32>
    %26 = arith.addf %24, %25 : vector<1x4x1xf32>
    %27 = math.rsqrt %26 : vector<1x4x1xf32>
    %28 = arith.mulf %4, %27 : vector<1x4x1xf32>
    %29 = arith.mulf %18, %28 : vector<1x4x1xf32>
    %30 = arith.subf %6, %29 : vector<1x4x1xf32>
    %31 = vector.broadcast %28 : vector<1x4x1xf32> to vector<2x4x256xf32>
    %32 = arith.mulf %7, %31 : vector<2x4x256xf32>
    %33 = vector.broadcast %30 : vector<1x4x1xf32> to vector<2x4x256xf32>
    %34 = arith.addf %32, %33 : vector<2x4x256xf32>
    %cst_10 = arith.constant 0.000000e+00 : f32
    %35 = vector.broadcast %cst_10 : f32 to vector<2x4x256xf32>
    %36 = arith.maximumf %34, %35 : vector<2x4x256xf32>
    %c0_11 = arith.constant 0 : index
    %c0_12 = arith.constant 0 : index
    %c0_13 = arith.constant 0 : index
    %37 = vector.load %arg3[%c0_11, %c0_12, %c0_13] : memref<2x4x256xf32, #tpu.memory_space<vmem>>, vector<2x4x256xf32>
    tpu.vector_store %arg3[%c0_11, %c0_12, %c0_13], %36 {strides = array<i32>} : memref<2x4x256xf32, #tpu.memory_space<vmem>>, vector<2x4x256xf32>,
    return
  }
  func.func @transform_0(%arg0: i32) -> (i32, i32, i32) {
    %c0_i32 = arith.constant 0 : i32
    %c0_i32_0 = arith.constant 0 : i32
    %c0_i32_1 = arith.constant 0 : i32
    return %c0_i32, %arg0, %c0_i32_0 : i32, i32, i32
  }
  func.func @transform_1(%arg0: i32) -> (i32, i32) {
    %c0_i32 = arith.constant 0 : i32
    %c0_i32_0 = arith.constant 0 : i32
    %c0_i32_1 = arith.constant 0 : i32
    return %c0_i32, %c0_i32_0 : i32, i32
  }
  func.func @transform_2(%arg0: i32) -> (i32, i32, i32) {
    %c0_i32 = arith.constant 0 : i32
    %c0_i32_0 = arith.constant 0 : i32
    %c0_i32_1 = arith.constant 0 : i32
    return %c0_i32, %arg0, %c0_i32_0 : i32, i32, i32
  }
}

</mosaic_0001>

<bundles_post_ra>
// kernel: batchnorm_relu.1
= control target key start
LH: loop header
LB: loop body
LE: loop exit
PB: predicated region body
PF: predicated region fallthrough
CT: control target
= control target key end

     0   :  { %vm22_vm0 = vcmask 1043456   ;;  %v118_v20 = vmov 0   ;;  %v119_v37 = vmov 1   ;;  %s120_s14 = smov 1   ;;  %v121_v44 = vmov 839922192   ;;  %s180_s0 = inlined_call_operand.vmem [shape: f32[2,4,256], index: 0, kind: input, shape index: {}]   ;;  %s181_s1 = inlined_call_operand.vmem [shape: f32[4,2], index: 1, kind: input, shape index: {}]   ;;  %s182_s2 = inlined_call_operand.vmem [shape: f32[2,4,256], index: 2, kind: output, shape index: {}]  }
   0x1   :  { %v140_v0 = vld [vmem:[%s180_s0] sm:$0xff]  ;;  %v145_v1 = vld [vmem:[%s180_s0 + $0x8] sm:$0xff]  ;;  %111 = vset.pattern.permute.xlu1 %v118_v20  ;;  %113 = vset.pattern.permute.xlu0 %v119_v37  ;;  %v76_v45 = vunpack.c.l.s4 %v121_v44  ;;  %v78_v46 = vlaneseq }
   0x2   :  { %v18_v2 = vcombine.high %v140_v0, %v140_v0  ;;  %v23_v3 = vsel %vm22_vm0, %v140_v0, 0.0  ;;  %v36_v4 = vmul.f32 %v140_v0, %v140_v0  ;;  %v19_v5 = vcombine.high %v145_v1, %v145_v1  ;;  %v13_v38 = vld [vmem:[%s181_s1] sm:$0xf] }
   0x3   :  { %v28_v6 = vsel %vm22_vm0, %v145_v1, 0.0  ;;  %v37_v7 = vmul.f32 %v145_v1, %v145_v1  ;;  %v77_v47 = vunpack.c.0.s8 %v76_v45  ;;  %v79_v48 = vshrl.u32 %v78_v46, 7 }
   0x4   :  { %v24_v8 = vsel %vm22_vm0, %v18_v2, 0.0  ;;  %v40_v9 = vcombine.high %v36_v4, %v36_v4  ;;  %v44_v10 = vsel %vm22_vm0, %v36_v4, 0.0  ;;  %v29_v11 = vsel %vm22_vm0, %v19_v5, 0.0 }
   0x5   :  { %v25_v12 = vadd.f32 %v24_v8, %v23_v3  ;;  %v41_v13 = vcombine.high %v37_v7, %v37_v7  ;;  %v49_v15 = vsel %vm22_vm0, %v37_v7, 0.0  ;;  %v30_v17 = vadd.f32 %v29_v11, %v28_v6 }
   0x6   :  { %v45_v14 = vsel %vm22_vm0, %v40_v9, 0.0  ;;  %v80_v49 = vsub.s32 %v77_v47, %v79_v48 }
   0x7   :  { %26 = vadd.xlane.f32.xlu0 %v25_v12  ;;  %v46_v16 = vadd.f32 %v45_v14, %v44_v10  ;;  %v50_v18 = vsel %vm22_vm0, %v41_v13, 0.0 }
   0x8   :  { %v51_v19 = vadd.f32 %v50_v18, %v49_v15 }
   0x9   :  { %47 = vadd.xlane.f32.xlu1 %v46_v16 }
   0xb   :  { %31 = vadd.xlane.f32.xlu0 %v30_v17 }
   0xd   :  { %52 = vadd.xlane.f32.xlu1 %v51_v19 }
  0x94   :  { %v27_v21 = vpop.xlane.xlu0 %26 }
  0x95   :  { %v33_v24 = vsel %vm22_vm0, %v27_v21, 0.0 }
  0x96   :  { %v48_v22 = vpop.xlane.xlu1 %47 }
  0x97   :  { %v54_v28 = vsel %vm22_vm0, %v48_v22, 0.0 }
  0x98   :  { %v32_v23 = vpop.xlane.xlu0 %31 }
  0x99   :  { %v34_v25 = vsel %vm22_vm0, %v32_v23, 0.0 }
  0x9a   :  { %v35_v26 = vadd.f32 %v34_v25, %v33_v24  ;;  %v53_v27 = vpop.xlane.xlu1 %52 }
  0x9b   :  { %v55_v29 = vsel %vm22_vm0, %v53_v27, 0.0 }
  0x9c   :  { %v57_v30 = vmul.f32 0.001953125, %v35_v26  ;;  %v56_v31 = vadd.f32 %v55_v29, %v54_v28 }
  0x9e   :  { %v59_v32 = vmul.f32 %v57_v30, %v57_v30  ;;  %v58_v33 = vmul.f32 0.001953125, %v56_v31 }
  0xa0   :  { %v60_v34 = vsub.f32 %v58_v33, %v59_v32 }
  0xa2   :  { %v61_v35 = vmax.f32 %v60_v34, 0.0 }
  0xa4   :  { %v62_v36 = vadd.f32 1e-05, %v61_v35 }
  0xa6   :  { %116 = vrsqrt.f32 %v62_v36 }
  0xb0   :  { %v117_v39 = vpop.eup %116 }
  0xb1   :  { %v64_v40 = vmul.f32 %v117_v39, %v13_v38 }
  0xb3   :  { %73 = vperm.xlu1 %111, %v64_v40   ;;  %v65_v41 = vmul.f32 %v64_v40, %v57_v30 }
  0xb5   :  { %67 = vrot.lane.b32.xlu0 %v65_v41, %s120_s14 }
  0xb7   :  { %112 = vset.pattern.permute.xlu1 %v119_v37 }
 0x127   :  { %v68_v42 = vpop.permute.xlu0 %67 }
 0x128   :  { %v70_v43 = vsub.f32 %v13_v38, %v68_v42 }
 0x12a   :  { %87 = vperm.xlu1 %112, %v70_v43  }
 0x132   :  { %v74_v50 = vpop.permute.xlu1 %73 }
 0x133   :  { %v81_v51 = vrot.slane %v74_v50, %v80_v49 }
 0x135   :  { %v83_v53 = vmul.f32 %v81_v51, %v140_v0  ;;  %v84_v54 = vmul.f32 %v81_v51, %v145_v1 }
 0x1a9   :  { %v88_v52 = vpop.permute.xlu1 %87 }
 0x1aa   :  { %v95_v55 = vrot.slane %v88_v52, %v80_v49 }
 0x1ac   :  { %v97_v56 = vadd.f32 %v95_v55, %v83_v53  ;;  %v98_v57 = vadd.f32 %v95_v55, %v84_v54 }
 0x1ae   :  { %v99_v58 = vmax.f32 %v97_v56, 0.0  ;;  %v100_v59 = vmax.f32 %v98_v57, 0.0 }
 0x1b0   :  { %101 = vst [vmem:[%s182_s2] sm:$0xff] %v99_v58  ;;  %102 = vst [vmem:[%s182_s2 + $0x8] sm:$0xff] %v100_v59 }

</bundles_post_ra>
